<compile_context>
chip_gen: v5e
topology: v5e:2x2
jax: 0.10.0
libtpu: 0.0.40
codegen_flags: <defaults>
</compile_context>

<pallas_src>
import functools
import math

import jax
import jax.numpy as jnp
from jax import lax
from jax.experimental import pallas as pl
from jax.experimental.pallas import tpu as pltpu

_VMEM_LIMIT = 64 * 1024 * 1024
_LN_EPS = 1e-8
_NEG_INF = -1e30


def _round_up(x, m):
    return ((x + m - 1) // m) * m


def _compiler_params(n_grid_axes=1):
    return pltpu.CompilerParams(
        dimension_semantics=("parallel",) * n_grid_axes,
        vmem_limit_bytes=_VMEM_LIMIT,
    )


# --------------------------------------------------------------------------
# Row-tiled kernels: operate on [N, D] slabs, tiled over rows.
# --------------------------------------------------------------------------

def _linear_kernel(x_ref, w_ref, b_ref, o_ref):
    # y = x @ W_t + b      (W_t is pre-transposed: [Din, Dout])
    x = x_ref[...]
    y = jnp.dot(x, w_ref[...], preferred_element_type=jnp.float32)
    y = y + b_ref[...].astype(jnp.float32)
    o_ref[...] = y.astype(o_ref.dtype)


def _layernorm_kernel(x_ref, g_ref, b_ref, o_ref):
    x = x_ref[...].astype(jnp.float32)
    mu = jnp.mean(x, axis=-1, keepdims=True)
    xc = x - mu
    var = jnp.mean(xc * xc, axis=-1, keepdims=True)
    inv = lax.rsqrt(var + _LN_EPS)
    y = xc * inv * g_ref[...].astype(jnp.float32) + b_ref[...].astype(jnp.float32)
    o_ref[...] = y.astype(o_ref.dtype)


def _ffn_kernel(x_ref, w1_ref, b1_ref, w2_ref, b2_ref, o_ref):
    # Fused PointWiseFeedForward (eval mode): relu(x@W1_t+b1)@W2_t+b2 + x
    # Dropouts are identity in eval mode.
    x = x_ref[...]
    h = jnp.dot(x, w1_ref[...], preferred_element_type=jnp.float32)
    h = jnp.maximum(h + b1_ref[...].astype(jnp.float32), 0.0)          # ReLU (VPU)
    y = jnp.dot(h.astype(x.dtype), w2_ref[...],
                preferred_element_type=jnp.float32)
    y = y + b2_ref[...].astype(jnp.float32) + x.astype(jnp.float32)    # residual
    o_ref[...] = y.astype(o_ref.dtype)


def _row_tiled_call(kernel, x2d, extras, out_dim, *, tm=256):
    """Run `kernel` over row tiles of x2d [N, Din].

    `extras` is a list of (array, block_shape) pairs that are kept fully
    resident (grid-invariant index_map).  Rows are padded up to a multiple of
    the effective tile instead of asserting divisibility.
    """
    N, Din = x2d.shape
    tm_eff = min(tm, _round_up(max(N, 1), 8))
    n_pad = _round_up(N, tm_eff)
    xp = x2d if n_pad == N else jnp.pad(x2d, ((0, n_pad - N), (0, 0)))

    extra_arrays = [a for a, _ in extras]
    extra_specs = [pl.BlockSpec(bs, lambda i, n=len(bs): (0,) * n)
                   for _, bs in extras]

    out = pl.pallas_call(
        kernel,
        out_shape=jax.ShapeDtypeStruct((n_pad, out_dim), x2d.dtype),
        grid_spec=pltpu.PrefetchScalarGridSpec(
            num_scalar_prefetch=0,
            grid=(n_pad // tm_eff,),
            in_specs=[pl.BlockSpec((tm_eff, Din), lambda i: (i, 0))] + extra_specs,
            out_specs=pl.BlockSpec((tm_eff, out_dim), lambda i: (i, 0)),
        ),
        compiler_params=_compiler_params(1),
    )(xp, *extra_arrays)
    return out[:N]


def linear_2d(x2d, w_t, b, *, tm=256):
    din, dout = w_t.shape
    return _row_tiled_call(
        _linear_kernel, x2d,
        [(w_t, (din, dout)), (b.reshape(1, dout), (1, dout))],
        dout, tm=tm)


def layer_norm(x, gamma, beta, *, tm=256):
    B, S, D = x.shape
    out = _row_tiled_call(
        _layernorm_kernel, x.reshape(B * S, D),
        [(gamma.reshape(1, D), (1, D)), (beta.reshape(1, D), (1, D))],
        D, tm=tm)
    return out.reshape(B, S, D)


def pointwise_ffn(x, w1_t, b1, w2_t, b2, *, tm=256):
    B, S, D = x.shape
    out = _row_tiled_call(
        _ffn_kernel, x.reshape(B * S, D),
        [(w1_t, (D, D)), (b1.reshape(1, D), (1, D)),
         (w2_t, (D, D)), (b2.reshape(1, D), (1, D))],
        D, tm=tm)
    return out.reshape(B, S, D)


# --------------------------------------------------------------------------
# Causal multi-head attention (eval mode; attention dropout is identity).
# --------------------------------------------------------------------------

def _attn_kernel(q_ref, k_ref, v_ref, o_ref, *, scale):
    # One (batch, head) slice: q/k/v are (1, S, dh) blocks.
    q = q_ref[0].astype(jnp.float32)
    k = k_ref[0].astype(jnp.float32)
    v = v_ref[0].astype(jnp.float32)

    s = jnp.einsum("qd,kd->qk", q, k,
                   preferred_element_type=jnp.float32) * scale
    S = s.shape[0]
    row = lax.broadcasted_iota(jnp.int32, (S, S), 0)
    col = lax.broadcasted_iota(jnp.int32, (S, S), 1)
    s = jnp.where(col <= row, s, _NEG_INF)                    # causal mask

    m = jnp.max(s, axis=-1, keepdims=True)
    p = jnp.exp(s - m)
    p = p / jnp.sum(p, axis=-1, keepdims=True)

    o = jnp.dot(p, v, preferred_element_type=jnp.float32)
    o_ref[0] = o.astype(o_ref.dtype)


def causal_mha(q_in, kv_in, layer, num_heads):
    """PyTorch nn.MultiheadAttention(Q, K=V=kv) with a causal bool mask."""
    B, S, D = q_in.shape
    dh = D // num_heads

    q = linear_2d(q_in.reshape(B * S, D), layer["wq_t"], layer["bq"])
    k = linear_2d(kv_in.reshape(B * S, D), layer["wk_t"], layer["bk"])
    v = linear_2d(kv_in.reshape(B * S, D), layer["wv_t"], layer["bv"])

    def split_heads(x):
        return (x.reshape(B, S, num_heads, dh)
                 .transpose(0, 2, 1, 3)
                 .reshape(B * num_heads, S, dh))

    qh, kh, vh = split_heads(q), split_heads(k), split_heads(v)
    scale = 1.0 / math.sqrt(dh)

    oh = pl.pallas_call(
        functools.partial(_attn_kernel, scale=scale),
        out_shape=jax.ShapeDtypeStruct((B * num_heads, S, dh), q_in.dtype),
        grid_spec=pltpu.PrefetchScalarGridSpec(
            num_scalar_prefetch=0,
            grid=(B * num_heads,),
            in_specs=[pl.BlockSpec((1, S, dh), lambda i: (i, 0, 0))] * 3,
            out_specs=pl.BlockSpec((1, S, dh), lambda i: (i, 0, 0)),
        ),
        compiler_params=_compiler_params(1),
    )(qh, kh, vh)

    o = (oh.reshape(B, num_heads, S, dh)
           .transpose(0, 2, 1, 3)
           .reshape(B * S, D))
    o = linear_2d(o, layer["wo_t"], layer["bo"])
    return o.reshape(B, S, D)


# --------------------------------------------------------------------------
# Full Log2feats forward (Pallas pipeline).
# --------------------------------------------------------------------------

def log2feats_forward(log_seqs, params, *, num_heads):
    B, S, D = log_seqs.shape
    seqs = log_seqs + params["pos_emb"][None, :S, :]
    # NOTE: the PyTorch forward mutates log_seqs in place (`seqs += pos_emb`)
    # before building timeline_mask, so the mask is computed on the shifted values.
    keep = (seqs != 0).astype(seqs.dtype)
    # emb_dropout: identity in eval mode.
    seqs = seqs * keep

    for L in params["layers"]:
        q = layer_norm(seqs, L["attn_ln_g"], L["attn_ln_b"])
        seqs = q + causal_mha(q, seqs, L, num_heads)
        seqs = layer_norm(seqs, L["ffn_ln_g"], L["ffn_ln_b"])
        seqs = pointwise_ffn(seqs, L["w1_t"], L["b1"], L["w2_t"], L["b2"])
        seqs = seqs * keep

    return layer_norm(seqs, params["last_ln_g"], params["last_ln_b"])


def prepare_params(raw):
    """Pre-transpose all PyTorch-layout [out, in] weights ONCE -> [in, out]."""
    p = {"pos_emb": raw["pos_emb"],
         "last_ln_g": raw["last_ln_g"], "last_ln_b": raw["last_ln_b"],
         "layers": []}
    for L in raw["layers"]:
        p["layers"].append({
            "attn_ln_g": L["attn_ln_g"], "attn_ln_b": L["attn_ln_b"],
            "wq_t": L["wq"].T, "bq": L["bq"],
            "wk_t": L["wk"].T, "bk": L["bk"],
            "wv_t": L["wv"].T, "bv": L["bv"],
            "wo_t": L["wo"].T, "bo": L["bo"],
            "ffn_ln_g": L["ffn_ln_g"], "ffn_ln_b": L["ffn_ln_b"],
            "w1_t": L["w1"].T, "b1": L["b1"],
            "w2_t": L["w2"].T, "b2": L["b2"],
        })
    return p


# --------------------------------------------------------------------------
# Pure-JAX reference (straight port of the PyTorch math, eval mode).
# --------------------------------------------------------------------------

def _ref_ln(x, g, b, eps=_LN_EPS):
    mu = jnp.mean(x, axis=-1, keepdims=True)
    var = jnp.mean((x - mu) ** 2, axis=-1, keepdims=True)
    return (x - mu) / jnp.sqrt(var + eps) * g + b


def _ref_mha(q_in, kv_in, L, H):
    B, S, D = q_in.shape
    dh = D // H
    q = q_in @ L["wq"].T + L["bq"]
    k = kv_in @ L["wk"].T + L["bk"]
    v = kv_in @ L["wv"].T + L["bv"]

    def sh(x):
        return x.reshape(B, S, H, dh).transpose(0, 2, 1, 3)

    qh, kh, vh = sh(q), sh(k), sh(v)
    s = jnp.einsum("bhqd,bhkd->bhqk", qh, kh) / math.sqrt(dh)
    mask = jnp.tril(jnp.ones((S, S), dtype=bool))
    s = jnp.where(mask[None, None], s, -jnp.inf)
    p = jax.nn.softmax(s, axis=-1)
    o = jnp.einsum("bhqk,bhkd->bhqd", p, vh)
    o = o.transpose(0, 2, 1, 3).reshape(B, S, D)
    return o @ L["wo"].T + L["bo"]


def _ref_ffn(x, L):
    h = jnp.maximum(x @ L["w1"].T + L["b1"], 0.0)
    return h @ L["w2"].T + L["b2"] + x


def ref_log2feats(log_seqs, raw, *, num_heads):
    S = log_seqs.shape[1]
    seqs = log_seqs + raw["pos_emb"][None, :S, :]
    keep = (seqs != 0).astype(seqs.dtype)
    seqs = seqs * keep
    for L in raw["layers"]:
        q = _ref_ln(seqs, L["attn_ln_g"], L["attn_ln_b"])
        seqs = q + _ref_mha(q, seqs, L, num_heads)
        seqs = _ref_ln(seqs, L["ffn_ln_g"], L["ffn_ln_b"])
        seqs = _ref_ffn(seqs, L)
        seqs = seqs * keep
    return _ref_ln(seqs, raw["last_ln_g"], raw["last_ln_b"])


# --------------------------------------------------------------------------

if __name__ == "__main__":
    B, S, D, H = 2, 8, 64, 8        # user_emb_dim = item_emb_dim = 64, 8 heads
    n_layers = 2

    keys = iter(jax.random.split(jax.random.PRNGKey(0), 64))

    def rnd(shape, scale=0.1):
        return (scale * jax.random.normal(next(keys), shape)).astype(jnp.float32)

    raw = {
        "pos_emb": rnd((S, D), 0.5),
        "last_ln_g": jnp.ones((D,), jnp.float32),
        "last_ln_b": jnp.zeros((D,), jnp.float32),
        "layers": [],
    }
    for _ in range(n_layers):
        raw["layers"].append({
            "attn_ln_g": jnp.ones((D,), jnp.float32),
            "attn_ln_b": jnp.zeros((D,), jnp.float32),
            "wq": rnd((D, D)), "bq": rnd((D,), 0.02),
            "wk": rnd((D, D)), "bk": rnd((D,), 0.02),
            "wv": rnd((D, D)), "bv": rnd((D,), 0.02),
            "wo": rnd((D, D)), "bo": rnd((D,), 0.02),
            "ffn_ln_g": jnp.ones((D,), jnp.float32),
            "ffn_ln_b": jnp.zeros((D,), jnp.float32),
            "w1": rnd((D, D)), "b1": rnd((D,), 0.02),
            "w2": rnd((D, D)), "b2": rnd((D,), 0.02),
        })

    log_seqs = jax.random.normal(next(keys), (B, S, D), jnp.float32)

    params = prepare_params(raw)
    out = log2feats_forward(log_seqs, params, num_heads=H)
    out = jax.block_until_ready(out)

    ref = ref_log2feats(log_seqs, raw, num_heads=H)
    assert out.shape == (B, S, D)
    assert jnp.allclose(out, ref, atol=1e-3, rtol=1e-3), "mismatch vs reference"

    print("KERNEL_OK")
</pallas_src>

<mosaic_0001>
module attributes {stable_mosaic.version = 11 : i64} {
  func.func @_layernorm_kernel(%arg0: i32, %arg1: memref<16x64xf32, #tpu.memory_space<vmem>>, %arg2: memref<1x64xf32, #tpu.memory_space<vmem>>, %arg3: memref<1x64xf32, #tpu.memory_space<vmem>>, %arg4: memref<16x64xf32, #tpu.memory_space<vmem>>) attributes {dimension_semantics = [#tpu.dimension_semantics<parallel>], iteration_bounds = array<i64: 1>, scalar_prefetch = 0 : i64, scratch_operands = 0 : i64, tpu.core_type = #tpu.core_type<tc>, window_params = [{transform_indices = @transform_0, window_bounds = array<i64: 16, 64>}, {pipeline_mode = #tpu.pipeline_mode<synchronous>, transform_indices = @transform_1, window_bounds = array<i64: 1, 64>}, {pipeline_mode = #tpu.pipeline_mode<synchronous>, transform_indices = @transform_2, window_bounds = array<i64: 1, 64>}, {transform_indices = @transform_3, window_bounds = array<i64: 16, 64>}]} {
    %c0 = arith.constant 0 : index
    %c0_0 = arith.constant 0 : index
    %0 = vector.load %arg1[%c0, %c0_0] : memref<16x64xf32, #tpu.memory_space<vmem>>, vector<16x64xf32>
    %cst = arith.constant dense<0.000000e+00> : vector<16xf32>
    %1 = vector.multi_reduction <add>, %0, %cst [1] : vector<16x64xf32> to vector<16xf32>
    %2 = vector.shape_cast %1 : vector<16xf32> to vector<16x1xf32>
    %cst_1 = arith.constant 6.400000e+01 : f32
    %3 = vector.broadcast %cst_1 : f32 to vector<16x1xf32>
    %4 = arith.divf %2, %3 : vector<16x1xf32>
    %5 = vector.broadcast %4 : vector<16x1xf32> to vector<16x64xf32>
    %6 = arith.subf %0, %5 : vector<16x64xf32>
    %7 = arith.mulf %6, %6 : vector<16x64xf32>
    %cst_2 = arith.constant dense<0.000000e+00> : vector<16xf32>
    %8 = vector.multi_reduction <add>, %7, %cst_2 [1] : vector<16x64xf32> to vector<16xf32>
    %9 = vector.shape_cast %8 : vector<16xf32> to vector<16x1xf32>
    %cst_3 = arith.constant 6.400000e+01 : f32
    %10 = vector.broadcast %cst_3 : f32 to vector<16x1xf32>
    %11 = arith.divf %9, %10 : vector<16x1xf32>
    %cst_4 = arith.constant 9.99999993E-9 : f32
    %12 = vector.broadcast %cst_4 : f32 to vector<16x1xf32>
    %13 = arith.addf %11, %12 : vector<16x1xf32>
    %14 = math.rsqrt %13 : vector<16x1xf32>
    %15 = vector.broadcast %14 : vector<16x1xf32> to vector<16x64xf32>
    %16 = arith.mulf %6, %15 : vector<16x64xf32>
    %c0_5 = arith.constant 0 : index
    %c0_6 = arith.constant 0 : index
    %17 = vector.load %arg2[%c0_5, %c0_6] : memref<1x64xf32, #tpu.memory_space<vmem>>, vector<1x64xf32>
    %18 = vector.broadcast %17 : vector<1x64xf32> to vector<16x64xf32>
    %19 = arith.mulf %16, %18 : vector<16x64xf32>
    %c0_7 = arith.constant 0 : index
    %c0_8 = arith.constant 0 : index
    %20 = vector.load %arg3[%c0_7, %c0_8] : memref<1x64xf32, #tpu.memory_space<vmem>>, vector<1x64xf32>
    %21 = vector.broadcast %20 : vector<1x64xf32> to vector<16x64xf32>
    %22 = arith.addf %19, %21 : vector<16x64xf32>
    %c0_9 = arith.constant 0 : index
    %c0_10 = arith.constant 0 : index
    %23 = vector.load %arg4[%c0_9, %c0_10] : memref<16x64xf32, #tpu.memory_space<vmem>>, vector<16x64xf32>
    tpu.vector_store %arg4[%c0_9, %c0_10], %22 {strides = array<i32>} : memref<16x64xf32, #tpu.memory_space<vmem>>, vector<16x64xf32>,
    return
  }
  func.func @transform_0(%arg0: i32) -> (i32, i32) {
    %c0_i32 = arith.constant 0 : i32
    %c0_i32_0 = arith.constant 0 : i32
    return %arg0, %c0_i32 : i32, i32
  }
  func.func @transform_1(%arg0: i32) -> (i32, i32) {
    %c0_i32 = arith.constant 0 : i32
    %c0_i32_0 = arith.constant 0 : i32
    %c0_i32_1 = arith.constant 0 : i32
    return %c0_i32, %c0_i32_0 : i32, i32
  }
  func.func @transform_2(%arg0: i32) -> (i32, i32) {
    %c0_i32 = arith.constant 0 : i32
    %c0_i32_0 = arith.constant 0 : i32
    %c0_i32_1 = arith.constant 0 : i32
    return %c0_i32, %c0_i32_0 : i32, i32
  }
  func.func @transform_3(%arg0: i32) -> (i32, i32) {
    %c0_i32 = arith.constant 0 : i32
    %c0_i32_0 = arith.constant 0 : i32
    return %arg0, %c0_i32 : i32, i32
  }
}

</mosaic_0001>

<bundles_post_ra>
// kernel: tpu_custom_call.1
= control target key start
LH: loop header
LB: loop body
LE: loop exit
PB: predicated region body
PF: predicated region fallthrough
CT: control target
= control target key end

     0   :  { %8 = vsyncpa [#allocation3], 0  ;;  %s275_s0 = inlined_call_operand.hbm [shape: f32[16,64], index: 0, kind: input, shape index: {}]   ;;  %s276_s1 = inlined_call_operand.hbm [shape: f32[1,64], index: 1, kind: input, shape index: {}]   ;;  %s277_s2 = inlined_call_operand.vmem [shape: f32[1,64], index: 2, kind: input, shape index: {}]   ;;  %s278_s3 = inlined_call_operand.hbm [shape: f32[16,64], index: 3, kind: output, shape index: {}]  }
   0x1   :  { %9 = vsyncpa [#allocation6], 0 }
   0x2   :  { %10 = vsyncpa [#allocation4], 0  ;;  %s15_s14 = sshll.u32 %s275_s0, 4  ;;  %s225_s15 = smov [#allocation2]   ;;  %s16_s14 = int_to_ptr.hbm [resolvable:$true] %s15_s14 }
   0x3   :  { %s17_s16 = sshll.u32 %s225_s15, 4  ;;  %s29_s19 = sshll.u32 %s276_s1, 4  ;;  %s18_s16 = int_to_ptr.vmem [resolvable:$true] %s17_s16  ;;  %s30_s19 = int_to_ptr.hbm [resolvable:$true] %s29_s19 }
   0x4   :  { %s226_s20 = smov 128   ;;  %s227_s21 = smov 8  }
   0x5   :  { %23 = dma.hbm_to_vmem [thread:$0]  %s16_s14, 256, %s18_s16, [#allocation3], %s226_s20, %s226_s20, %s227_s21  }
   0x6   :  { %s228_s22 = smov [#allocation5]  }
   0x7   :  { %s31_s23 = sshll.u32 %s228_s22, 4  ;;  %s32_s23 = int_to_ptr.vmem [resolvable:$true] %s31_s23 }
   0x8   :  { %34 = dma.hbm_to_vmem [thread:$0]  %s30_s19, 16, %s32_s23, [#allocation6]  }
   0x9   :  { %219 = dma.done.wait [#allocation3], 256  }
   0xa   :  { %220 = vsyncadd [#allocation3], 4294967040 }
   0xb   :  { %221 = dma.done.wait [#allocation6], 16  }
   0xc   :  { %222 = vsyncadd [#allocation6], 4294967280  ;;  %vm47_vm0 = vcmask 523264   ;;  %v45_v0 = vld [vmem:[#allocation2] sm:$0xff]  ;;  %v46_v2 = vld [vmem:[#allocation2 + $0x8] sm:$0xff]  ;;  %v229_v4 = vmov 64.0  }
   0xd   :  { %v48_v1 = vsel %vm47_vm0, %v45_v0, 0.0  ;;  %v51_v3 = vsel %vm47_vm0, %v46_v2, 0.0  ;;  %141 = vrcp.f32 %v229_v4  ;;  %v139_v35 = vld [vmem:[#allocation5] ss:$0 sm:$0xff]  ;;  %v140_v39 = vld [vmem:[%s277_s2] ss:$0 sm:$0xff] }
   0xe   :  { %49 = vadd.xlane.f32.xlu0 %v48_v1  ;;  %s230_s24 = smov [#allocation7]   ;;  %s119_s28 = sshll.u32 %s278_s3, 4  ;;  %s120_s28 = int_to_ptr.hbm [resolvable:$true] %s119_s28 }
   0xf   :  { %s117_s25 = sshll.u32 %s230_s24, 4  ;;  %s118_s25 = int_to_ptr.vmem [resolvable:$true] %s117_s25 }
  0x13   :  { %v142_v5 = vpop.eup %141 }
  0x14   :  { %v55_v6 = vmul.f32 64.0, %v142_v5  ;;  %vm59_vm1 = vweird.f32 %v142_v5 }
  0x16   :  { %52 = vadd.xlane.f32.xlu0 %v51_v3  ;;  %v56_v7 = vsub.f32 1.0, %v55_v6 }
  0x18   :  { %v57_v8 = vmul.f32 %v142_v5, %v56_v7 }
  0x1a   :  { %v58_v9 = vadd.f32 %v142_v5, %v57_v8 }
  0x1c   :  { %v60_v10 = vsel %vm59_vm1, %v142_v5, %v58_v9 }
  0x81   :  { %v50_v11 = vpop.xlane.xlu0 %49 }
  0x82   :  { %v61_v12 = vmul.f32 %v60_v10, %v50_v11 }
  0x84   :  { %v63_v13 = vsub.f32 %v45_v0, %v61_v12 }
  0x86   :  { %v65_v14 = vmul.f32 %v63_v13, %v63_v13 }
  0x88   :  { %v67_v15 = vsel %vm47_vm0, %v65_v14, 0.0 }
  0x89   :  { %68 = vadd.xlane.f32.xlu1 %v67_v15  ;;  %v53_v16 = vpop.xlane.xlu0 %52 }
  0x8a   :  { %v62_v17 = vmul.f32 %v60_v10, %v53_v16 }
  0x8c   :  { %v64_v18 = vsub.f32 %v46_v2, %v62_v17 }
  0x8e   :  { %v66_v19 = vmul.f32 %v64_v18, %v64_v18 }
  0x90   :  { %v70_v20 = vsel %vm47_vm0, %v66_v19, 0.0 }
  0x91   :  { %71 = vadd.xlane.f32.xlu1 %v70_v20 }
  0xfc   :  { %v69_v21 = vpop.xlane.xlu1 %68 }
  0xfd   :  { %v73_v22 = vmul.f32 %v69_v21, %v60_v10 }
  0xff   :  { %v75_v23 = vadd.f32 1e-08, %v73_v22 }
 0x101   :  { %143 = vrsqrt.f32 %v75_v23  ;;  %vm83_vm3 = vweird.f32 %v75_v23 }
 0x104   :  { %v72_v24 = vpop.xlane.xlu1 %71 }
 0x105   :  { %v74_v25 = vmul.f32 %v72_v24, %v60_v10 }
 0x107   :  { %v144_v26 = vpop.eup %143  ;;  %v76_v27 = vadd.f32 1e-08, %v74_v25 }
 0x108   :  { %v78_v28 = vmul.f32 %v144_v26, %v75_v23  ;;  %vm84_vm2 = vweird.f32 %v144_v26 }
 0x109   :  { %145 = vrsqrt.f32 %v76_v27  ;;  %vm85_vm4 = vmor %vm83_vm3, %vm84_vm2  ;;  %vm93_vm6 = vweird.f32 %v76_v27 }
 0x10a   :  { %v79_v29 = vmul.f32 %v144_v26, %v78_v28 }
 0x10c   :  { %v80_v30 = vmul.f32 0.5, %v79_v29 }
 0x10e   :  { %v81_v31 = vsub.f32 1.5, %v80_v30 }
 0x10f   :  { %v146_v32 = vpop.eup %145 }
 0x110   :  { %v82_v33 = vmul.f32 %v144_v26, %v81_v31  ;;  %v88_v34 = vmul.f32 %v146_v32, %v76_v27  ;;  %vm94_vm5 = vweird.f32 %v146_v32 }
 0x111   :  { %vm95_vm7 = vmor %vm93_vm6, %vm94_vm5 }
 0x112   :  { %v86_v36 = vsel %vm85_vm4, %v144_v26, %v82_v33  ;;  %v89_v37 = vmul.f32 %v146_v32, %v88_v34 }
 0x113   :  { %v97_v38 = vmul.f32 %v86_v36, %v63_v13 }
 0x114   :  { %v90_v40 = vmul.f32 0.5, %v89_v37 }
 0x115   :  { %v103_v41 = vmul.f32 %v139_v35, %v97_v38 }
 0x116   :  { %v91_v42 = vsub.f32 1.5, %v90_v40 }
 0x117   :  { %v109_v43 = vadd.f32 %v140_v39, %v103_v41 }
 0x118   :  { %v92_v44 = vmul.f32 %v146_v32, %v91_v42 }
 0x119   :  { %111 = vst.msk [vmem:[#allocation7] sm:$0xff] %vm47_vm0, %v109_v43 }
 0x11a   :  { %v96_v45 = vsel %vm95_vm7, %v146_v32, %v92_v44 }
 0x11b   :  { %v98_v46 = vmul.f32 %v96_v45, %v64_v18 }
 0x11d   :  { %v104_v47 = vmul.f32 %v139_v35, %v98_v46 }
 0x11f   :  { %v110_v48 = vadd.f32 %v140_v39, %v104_v47 }
 0x121   :  { %112 = vst.msk [vmem:[#allocation7 + $0x8] sm:$0xff] %vm47_vm0, %v110_v48 }
 0x122   :  { %125 = dma.vmem_to_hbm [thread:$0]  %s118_s25, 256, %s120_s28, [#allocation4], %s226_s20, %s226_s20, %s227_s21  }
 0x123   :  { %223 = dma.done.wait [#allocation4], 256  }
 0x124   :  { %224 = vsyncadd [#allocation4], 4294967040 }
 0x125   :  { %130 = vsyncpa [#allocation3], 1 }
 0x126   :  { %131 = vsyncpa [#allocation6], 1 }
 0x127   :  { %132 = vsyncpa [#allocation4], 1 }

</bundles_post_ra>
